<compile_context>
chip_gen: v7x
topology: tpu7x:2x2x1
jax: 0.10.0
libtpu: 0.0.40
codegen_flags: <defaults>
</compile_context>

<pallas_src>
from math import sqrt

import jax
import jax.numpy as jnp
from jax.experimental import pallas as pl
from jax.experimental.pallas import tpu as pltpu


def _round_up(x: int, m: int) -> int:
    return ((x + m - 1) // m) * m


def _sublane_multiple(dtype) -> int:
    # Native vreg tile is (8,128) for 32-bit, (16,128) for bf16, (32,128) for
    # int8/fp8 (sub-32-bit dtypes pack along sublanes).
    itemsize = jnp.dtype(dtype).itemsize
    return max(8, 32 // max(1, itemsize))


def _vmem_capacity_bytes() -> int:
    try:
        info = pltpu.get_tpu_info()
        cap = getattr(info, "vmem_capacity_bytes", None)
        if cap:
            return int(cap)
    except Exception:
        pass
    # Conservative default: v7x per-TensorCore capacity.
    return 64 * 1024 * 1024


def _pick_tile(dim: int, target: int, multiple: int, prefer_divisor_only: bool) -> int:
    """Largest tile <= target that is a multiple of `multiple`.

    Prefers an exact divisor of the aligned `dim` (so no padding is needed).
    If the best divisor is much smaller than the target and
    `prefer_divisor_only` is False, fall back to the target and accept padding
    (better tile quality for M/N reuse axes).
    """
    dim = _round_up(dim, multiple)
    target = max(multiple, min(target, dim))
    target = (target // multiple) * multiple

    best = multiple  # `multiple` always divides `dim` after alignment
    t = target
    while t >= multiple:
        if dim % t == 0:
            best = t
            break
        t -= multiple

    if prefer_divisor_only or best * 2 >= target:
        return best
    return target


# --------------------------- kernels ---------------------------------------


def _matmul_kernel_f32_out(x_ref, w_ref, o_ref):
    """Accumulate directly into the resident f32 output block (no scratch)."""

    @pl.when(pl.program_id(2) == 0)
    def _init():
        o_ref[...] = jnp.zeros_like(o_ref)

    o_ref[...] += jnp.dot(
        x_ref[...], w_ref[...], preferred_element_type=jnp.float32
    )


def _matmul_kernel_acc(x_ref, w_ref, o_ref, acc_ref):
    """f32 VMEM accumulator; cast to the (narrower) output dtype on the last K step."""

    @pl.when(pl.program_id(2) == 0)
    def _init():
        acc_ref[...] = jnp.zeros_like(acc_ref)

    acc_ref[...] += jnp.dot(
        x_ref[...], w_ref[...], preferred_element_type=jnp.float32
    )

    @pl.when(pl.program_id(2) == pl.num_programs(2) - 1)
    def _finalize():
        o_ref[...] = acc_ref[...].astype(o_ref.dtype)


# --------------------------- wrapper ----------------------------------------


def mlp_forward(
    x,
    w_t,
    *,
    tm: int = 512,
    tn: int = 512,
    tk: int = 512,
    force_pallas: bool = False,
):
    """Computes x @ w_t with a tiled Pallas matmul.

    x   : [B, in_dim]
    w_t : [in_dim, out_dim]  (pre-transposed PyTorch nn.Linear weight)
    returns [B, out_dim] in x.dtype
    """
    B, K = x.shape
    Kw, N = w_t.shape
    assert K == Kw, f"inner dims mismatch: {K} vs {Kw}"
    out_dtype = x.dtype

    # Tiny problems: pallas_call launch + pad/slice overhead dominates; let
    # XLA fuse the small dot instead.
    if not force_pallas and 2 * B * K * N < (1 << 21):  # < ~2 MFLOP
        return jnp.dot(x, w_t, preferred_element_type=out_dtype).astype(out_dtype)

    in_itemsize = jnp.dtype(x.dtype).itemsize
    out_itemsize = jnp.dtype(out_dtype).itemsize
    sub_m = _sublane_multiple(out_dtype)          # sublane axis of x / output
    # K is the lane axis of x and the sublane axis of w_t -> 128 dominates.
    k_align = max(128, _sublane_multiple(w_t.dtype))

    # ---- generation-aware VMEM budget -------------------------------------
    vmem_cap = _vmem_capacity_bytes()
    # ~48 MiB on v7x (64 MiB/TC), ~96 MiB on v5e/v6e (128 MiB).
    vmem_limit = min(int(vmem_cap * 0.75), 96 * 1024 * 1024)
    tile_budget = int(vmem_limit * 0.75)

    # ---- pick tiles: prefer divisors of the aligned dims (no pad/slice) ----
    tm = _pick_tile(B, tm, sub_m, prefer_divisor_only=False)
    tn = _pick_tile(N, tn, 128, prefer_divisor_only=False)
    # tk does not affect arithmetic intensity -> always take a divisor.
    tk = _pick_tile(K, tk, k_align, prefer_divisor_only=True)

    use_scratch = out_dtype != jnp.float32

    def footprint(tm_, tn_, tk_):
        f = 2 * (tm_ * tk_ + tk_ * tn_) * in_itemsize  # double-buffered inputs
        f += 2 * tm_ * tn_ * out_itemsize              # double-buffered output
        if use_scratch:
            f += tm_ * tn_ * 4                         # f32 accumulator
        return f

    # Shrink (tk first, then tn, then tm) if a config would blow the budget.
    while footprint(tm, tn, tk) > tile_budget:
        if tk > k_align:
            tk = max(k_align, (tk // 2 // k_align) * k_align)
        elif tn > 128:
            tn = max(128, (tn // 2 // 128) * 128)
        elif tm > sub_m:
            tm = max(sub_m, (tm // 2 // sub_m) * sub_m)
        else:
            break

    Mp = _round_up(_round_up(B, sub_m), tm)
    Kp = _round_up(_round_up(K, k_align), tk)
    Np = _round_up(_round_up(N, 128), tn)

    # ---- pad operands only if needed (zeros on K are mathematically inert) --
    if (Mp, Kp) != x.shape:
        x = jnp.pad(x, ((0, Mp - B), (0, Kp - K)))
    if (Kp, Np) != w_t.shape:
        w_t = jnp.pad(w_t, ((0, Kp - K), (0, Np - N)))

    grid = (Mp // tm, Np // tn, Kp // tk)

    # ---- cost estimate: count re-streamed input traffic ---------------------
    cost = pl.CostEstimate(
        flops=2 * Mp * Kp * Np,
        transcendentals=0,
        bytes_accessed=(
            Mp * Kp * in_itemsize * (Np // tn)     # x streamed once per N tile
            + Kp * Np * in_itemsize * (Mp // tm)   # w streamed once per M tile
            + Mp * Np * out_itemsize
        ),
    )

    kernel = _matmul_kernel_acc if use_scratch else _matmul_kernel_f32_out
    scratch_shapes = [pltpu.VMEM((tm, tn), jnp.float32)] if use_scratch else []

    out_padded = pl.pallas_call(
        kernel,
        out_shape=jax.ShapeDtypeStruct((Mp, Np), out_dtype),
        grid=grid,
        in_specs=[
            pl.BlockSpec((tm, tk), lambda i, j, k: (i, k)),
            pl.BlockSpec((tk, tn), lambda i, j, k: (k, j)),
        ],
        # Same (i, j) block for every k -> output stays resident across the
        # reduction axis (accumulator pattern).
        out_specs=pl.BlockSpec((tm, tn), lambda i, j, k: (i, j)),
        scratch_shapes=scratch_shapes,
        compiler_params=pltpu.CompilerParams(
            dimension_semantics=("parallel", "parallel", "arbitrary"),
            vmem_limit_bytes=vmem_limit,
        ),
        cost_estimate=cost,
    )(x, w_t)

    if (Mp, Np) != (B, N):
        return out_padded[:B, :N]
    return out_padded


if __name__ == "__main__":
    # Shapes consistent with the module: MLP(in_dim=32, out_dim=16).
    B, in_dim, out_dim = 8, 32, 16

    key = jax.random.PRNGKey(0)
    kx, kw = jax.random.split(key)

    x = jax.random.normal(kx, (B, in_dim), dtype=jnp.float32)

    # Deterministic weight mimicking nn.Linear's uniform(-1/sqrt(in), 1/sqrt(in)).
    bound = 1.0 / sqrt(in_dim)
    w = jax.random.uniform(
        kw, (out_dim, in_dim), dtype=jnp.float32, minval=-bound, maxval=bound
    )  # PyTorch layout [out_dim, in_dim]
    w_t = w.T  # [in_dim, out_dim] for the kernel

    # Force the Pallas path at the demo shape (otherwise the small-shape gate
    # would fall back to jnp.dot).
    y = mlp_forward(x, w_t, force_pallas=True)
    jax.block_until_ready(y)
    y_ref = x @ w.T
    assert y.shape == (B, out_dim), y.shape
    assert jnp.allclose(y, y_ref, atol=1e-5, rtol=1e-5)

    # Second check: a multi-step-K shape whose dims are already (8,128)-aligned
    # divisors, exercising the K reduction loop with zero pad/slice overhead.
    B2, K2, N2 = 192, 640, 384
    x2 = jax.random.normal(kx, (B2, K2), dtype=jnp.float32) * 0.1
    w2 = jax.random.normal(kw, (N2, K2), dtype=jnp.float32) * 0.05
    y2 = mlp_forward(x2, w2.T)
    jax.block_until_ready(y2)
    y2_ref = x2 @ w2.T
    assert y2.shape == (B2, N2), y2.shape
    assert jnp.allclose(y2, y2_ref, atol=2e-4, rtol=2e-4)

    print("KERNEL_OK")
</pallas_src>

<mosaic_0001>
module attributes {stable_mosaic.version = 11 : i64} {
  func.func @_matmul_kernel_f32_out(%arg0: i32, %arg1: i32, %arg2: i32, %arg3: memref<8x128xf32, #tpu.memory_space<vmem>>, %arg4: memref<128x128xf32, #tpu.memory_space<vmem>>, %arg5: memref<8x128xf32, #tpu.memory_space<vmem>>) attributes {dimension_semantics = [#tpu.dimension_semantics<parallel>, #tpu.dimension_semantics<parallel>, #tpu.dimension_semantics<arbitrary>], iteration_bounds = array<i64: 1, 1, 1>, scalar_prefetch = 0 : i64, scratch_operands = 0 : i64, tpu.core_type = #tpu.core_type<tc>, window_params = [{transform_indices = @transform_0, window_bounds = array<i64: 8, 128>}, {transform_indices = @transform_1, window_bounds = array<i64: 128, 128>}, {transform_indices = @transform_2, window_bounds = array<i64: 8, 128>}]} {
    %c0_i32 = arith.constant 0 : i32
    %0 = arith.cmpi eq, %arg2, %c0_i32 : i32
    %1 = arith.extui %0 : i1 to i32
    %c0_i32_0 = arith.constant 0 : i32
    %2 = arith.cmpi ne, %1, %c0_i32_0 : i32
    scf.if %2 {
      %cst_8 = arith.constant 0.000000e+00 : f32
      %9 = vector.broadcast %cst_8 : f32 to vector<8x128xf32>
      %c0_9 = arith.constant 0 : index
      %c0_10 = arith.constant 0 : index
      %10 = vector.load %arg5[%c0_9, %c0_10] : memref<8x128xf32, #tpu.memory_space<vmem>>, vector<8x128xf32>
      tpu.vector_store %arg5[%c0_9, %c0_10], %9 {strides = array<i32>} : memref<8x128xf32, #tpu.memory_space<vmem>>, vector<8x128xf32>,
    } else {
    }
    %c0 = arith.constant 0 : index
    %c0_1 = arith.constant 0 : index
    %3 = vector.load %arg5[%c0, %c0_1] : memref<8x128xf32, #tpu.memory_space<vmem>>, vector<8x128xf32>
    %c0_2 = arith.constant 0 : index
    %c0_3 = arith.constant 0 : index
    %4 = vector.load %arg3[%c0_2, %c0_3] : memref<8x128xf32, #tpu.memory_space<vmem>>, vector<8x128xf32>
    %c0_4 = arith.constant 0 : index
    %c0_5 = arith.constant 0 : index
    %5 = vector.load %arg4[%c0_4, %c0_5] : memref<128x128xf32, #tpu.memory_space<vmem>>, vector<128x128xf32>
    %cst = arith.constant dense<0.000000e+00> : vector<8x128xf32>
    %6 = tpu.matmul %4, %5, %cst {dimension_numbers = #tpu.dot_dimension_numbers<[1], [0], [0], [1], [0, 0, 1, 1], [], []>} : vector<8x128xf32>, vector<128x128xf32>, vector<8x128xf32> -> vector<8x128xf32>
    %7 = arith.addf %3, %6 : vector<8x128xf32>
    %c0_6 = arith.constant 0 : index
    %c0_7 = arith.constant 0 : index
    %8 = vector.load %arg5[%c0_6, %c0_7] : memref<8x128xf32, #tpu.memory_space<vmem>>, vector<8x128xf32>
    tpu.vector_store %arg5[%c0_6, %c0_7], %7 {strides = array<i32>} : memref<8x128xf32, #tpu.memory_space<vmem>>, vector<8x128xf32>,
    return
  }
  func.func @transform_0(%arg0: i32, %arg1: i32, %arg2: i32) -> (i32, i32) {
    %c0_i32 = arith.constant 0 : i32
    return %arg0, %arg2 : i32, i32
  }
  func.func @transform_1(%arg0: i32, %arg1: i32, %arg2: i32) -> (i32, i32) {
    %c0_i32 = arith.constant 0 : i32
    return %arg2, %arg1 : i32, i32
  }
  func.func @transform_2(%arg0: i32, %arg1: i32, %arg2: i32) -> (i32, i32) {
    %c0_i32 = arith.constant 0 : i32
    return %arg0, %arg1 : i32, i32
  }
}

</mosaic_0001>

<bundles_post_ra>
// kernel: tpu_custom_call.1
= control target key start
LH: loop header
LB: loop body
LE: loop exit
PB: predicated region body
PF: predicated region fallthrough
CT: control target
= control target key end

     0   :  { %7 = vsyncpa [#allocation3], 0  ;;  %s371_s0 = inlined_call_operand.hbm [shape: f32[8,128], index: 0, kind: input, shape index: {}]   ;;  %s372_s1 = inlined_call_operand.hbm [shape: f32[128,128], index: 1, kind: input, shape index: {}]   ;;  %s373_s2 = inlined_call_operand.hbm [shape: f32[8,128], index: 2, kind: output, shape index: {}]  }
   0x1   :  { %8 = vsyncpa [#allocation6], 0 }
   0x2   :  { %9 = vsyncpa [#allocation4], 0  ;;  %s305_s9 = smov [#allocation2]   ;;  %s306_s11 = smov [#allocation5]  }
   0x3   :  { %s16_s10 = sshll.u32 %s305_s9, 4  ;;  %s25_s12 = sshll.u32 %s306_s11, 4  ;;  %s17_s10 = int_to_ptr.vmem [resolvable:$true] %s16_s10  ;;  %s328_s12 = int_to_ptr.vmem [resolvable:$true] %s25_s12 }
   0x4   :  { %s233_s15 = scalar_lea.hbm %s371_s0, 128 }
   0x5   :  { %p234_p0 = scmp.ne.s32.totalorder %s371_s0, %s233_s15  ;;  %p237_p1 = scmp.lt.u32.totalorder %s233_s15, %s371_s0 }
   0x7   :  { %p239_p2 = pnand %p237_p1, %p234_p0 }
   0x9   :  { %242 = shalt.err (!%p239_p2)
}
   0xa   :  { %s243_s20 = scalar_lea.vmem %s17_s10, 128  ;;  %p248_p4 = scmp.lt.s32.totalorder %s17_s10, %s17_s10 }
   0xb   :  { %p244_p3 = scmp.ne.s32.totalorder %s17_s10, %s243_s20  ;;  %p249_p5 = scmp.lt.s32.totalorder %s243_s20, %s243_s20 }
   0xd   :  { %p250_p6 = por %p249_p5, %p248_p4 }
   0xf   :  { %p251_p7 = pnand %p250_p6, %p244_p3 }
  0x11   :  { %254 = shalt.err (!%p251_p7)
}
  0x12   :  { %19 = dma.hbm_to_vmem [thread:$0]  %s371_s0, 128, %s17_s10, [#allocation3]  }
  0x13   :  { %s255_s25 = scalar_lea.hbm %s372_s1, 2048 }
  0x14   :  { %p256_p8 = scmp.ne.s32.totalorder %s372_s1, %s255_s25  ;;  %p259_p9 = scmp.lt.u32.totalorder %s255_s25, %s372_s1 }
  0x16   :  { %p261_p10 = pnand %p259_p9, %p256_p8 }
  0x18   :  { %264 = shalt.err (!%p261_p10)
}
  0x19   :  { %s265_s30 = scalar_lea.vmem %s328_s12, 2048  ;;  %p270_p12 = scmp.lt.s32.totalorder %s328_s12, %s328_s12 }
  0x1a   :  { %p266_p11 = scmp.ne.s32.totalorder %s328_s12, %s265_s30  ;;  %p271_p13 = scmp.lt.s32.totalorder %s265_s30, %s265_s30 }
  0x1c   :  { %p272_p0 = por %p271_p13, %p270_p12 }
  0x1e   :  { %p273_p1 = pnand %p272_p0, %p266_p11 }
  0x20   :  { %276 = shalt.err (!%p273_p1)
}
  0x21   :  { %s307_s0 = smov 128   ;;  %s308_s3 = smov 8  }
  0x22   :  { %31 = dma.hbm_to_vmem [thread:$0]  %s372_s1, 2048, %s328_s12, [#allocation6], %s307_s0, %s307_s0, %s308_s3  }
  0x23   :  { %299 = dma.done.wait [#allocation3], 128  }
  0x24   :  { %300 = vsyncadd [#allocation3], 4294967168 }
  0x25   :  { %301 = dma.done.wait [#allocation6], 2048  }
  0x26   :  { %302 = vsyncadd [#allocation6], 4294965248  ;;  %v309_v0 = vmov 0.0|0.0   ;;  %vm310_vm0 = vmmov 0   ;;  %v311_v1 = vmov 0.0   ;;  %v45_v2 = vld [vmem:[#allocation5] sm:$0xff] }
  0x27   :  { %201 = vmatprep.subr.bf16.mxu0 %v309_v0  ;;  %198 = vmatprep.mubr.msk.f32.mxu0 %vm310_vm0, %v311_v1  ;;  %v46_v3 = vld [vmem:[#allocation5 + $0x8] sm:$0xff]  ;;  %v47_v4 = vld [vmem:[#allocation5 + $0x10] sm:$0xff]  ;;  %v48_v6 = vld [vmem:[#allocation5 + $0x18] sm:$0xff]  ;;  %s312_s1 = smov [#allocation7]  }
  0x28   :  { %v202_v5 = vpack.c.bf16 %v46_v3, %v45_v2  ;;  %v205_v7 = vpack.c.bf16 %v48_v6, %v47_v4  ;;  %v49_v8 = vld [vmem:[#allocation5 + $0x20] sm:$0xff]  ;;  %v50_v9 = vld [vmem:[#allocation5 + $0x28] sm:$0xff]  ;;  %v51_v11 = vld [vmem:[#allocation5 + $0x30] sm:$0xff]  ;;  %s139_s6 = sshll.u32 %s312_s1, 4  ;;  %s140_s6 = int_to_ptr.vmem [resolvable:$true] %s139_s6 }
  0x29   :  { %v208_v10 = vpack.c.bf16 %v50_v9, %v49_v8  ;;  %v52_v12 = vld [vmem:[#allocation5 + $0x38] sm:$0xff]  ;;  %v53_v14 = vld [vmem:[#allocation5 + $0x40] sm:$0xff]  ;;  %v54_v15 = vld [vmem:[#allocation5 + $0x48] sm:$0xff]  ;;  %s277_s7 = scalar_lea.vmem %s140_s6, 128  ;;  %p282_p3 = scmp.lt.s32.totalorder %s140_s6, %s140_s6 }
  0x2a   :  { %203 = vmatpush3.bf16.msra.mxu0 %v202_v5  ;;  %v211_v13 = vpack.c.bf16 %v52_v12, %v51_v11  ;;  %v214_v16 = vpack.c.bf16 %v54_v15, %v53_v14  ;;  %v55_v17 = vld [vmem:[#allocation5 + $0x50] sm:$0xff]  ;;  %v56_v18 = vld [vmem:[#allocation5 + $0x58] sm:$0xff]  ;;  %v57_v20 = vld [vmem:[#allocation5 + $0x60] sm:$0xff]  ;;  %p278_p2 = scmp.ne.s32.totalorder %s140_s6, %s277_s7  ;;  %p283_p4 = scmp.lt.s32.totalorder %s277_s7, %s277_s7 }
  0x2b   :  { %204 = vmatprep.subr.bf16.mxu0 %v309_v0  ;;  %v217_v19 = vpack.c.bf16 %v56_v18, %v55_v17  ;;  %v58_v21 = vld [vmem:[#allocation5 + $0x68] sm:$0xff]  ;;  %v59_v23 = vld [vmem:[#allocation5 + $0x70] sm:$0xff]  ;;  %v60_v24 = vld [vmem:[#allocation5 + $0x78] sm:$0xff] }
  0x2c   :  { %v220_v22 = vpack.c.bf16 %v58_v21, %v57_v20  ;;  %v223_v25 = vpack.c.bf16 %v60_v24, %v59_v23  ;;  %v44_v26 = vld [vmem:[#allocation2] sm:$0xff]  ;;  %p284_p5 = por %p283_p4, %p282_p3 }
  0x2e   :  { %206 = vmatpush3.bf16.msra.mxu0 %v205_v7  ;;  %p285_p6 = pnand %p284_p5, %p278_p2 }
  0x2f   :  { %207 = vmatprep.subr.bf16.mxu0 %v309_v0 }
  0x32   :  { %209 = vmatpush3.bf16.msra.mxu0 %v208_v10 }
  0x33   :  { %210 = vmatprep.subr.bf16.mxu0 %v309_v0 }
  0x36   :  { %212 = vmatpush3.bf16.msra.mxu0 %v211_v13 }
  0x37   :  { %213 = vmatprep.subr.bf16.mxu0 %v309_v0 }
  0x3a   :  { %215 = vmatpush3.bf16.msra.mxu0 %v214_v16 }
  0x3b   :  { %216 = vmatprep.subr.bf16.mxu0 %v309_v0 }
  0x3e   :  { %218 = vmatpush3.bf16.msra.mxu0 %v217_v19 }
  0x3f   :  { %219 = vmatprep.subr.bf16.mxu0 %v309_v0 }
  0x42   :  { %221 = vmatpush3.bf16.msra.mxu0 %v220_v22 }
  0x43   :  { %222 = vmatprep.subr.bf16.mxu0 %v309_v0 }
  0x46   :  { %224 = vmatpush3.bf16.msra.mxu0 %v223_v25 }
  0x49   :  { %199 = vmatmul.mubr.f32.vlgmr.msra.gmra.mrb[0].mxu0 %v44_v26 }
 0x11c   :  { %v127_v27 = vpop.f32.mrb[0].mxu0 }
 0x11d   :  { %v200_v28 = vpop.f32.mrb[1].mxu0  ;;  %132 = vst [vmem:[#allocation7] sm:$0xff] %v127_v27 }
 0x11e   :  { %288 = shalt.err (!%p285_p6)
}
 0x11f   :  { %s289_s10 = scalar_lea.hbm %s373_s2, 128 }
 0x120   :  { %p290_p7 = scmp.ne.s32.totalorder %s373_s2, %s289_s10  ;;  %p293_p8 = scmp.lt.u32.totalorder %s289_s10, %s373_s2 }
 0x122   :  { %p295_p9 = pnand %p293_p8, %p290_p7 }
 0x124   :  { %298 = shalt.err (!%p295_p9)
}
 0x125   :  { %142 = dma.vmem_to_hbm [thread:$0]  %s140_s6, 128, %s373_s2, [#allocation4]  }
 0x126   :  { %303 = dma.done.wait [#allocation4], 128  }
 0x127   :  { %304 = vsyncadd [#allocation4], 4294967168 }
 0x128   :  { %146 = vsyncpa [#allocation3], 1 }
 0x129   :  { %147 = vsyncpa [#allocation6], 1 }
 0x12a   :  { %148 = vsyncpa [#allocation4], 1 }

</bundles_post_ra>
